<compile_context>
chip_gen: v7x
topology: tpu7x:2x2x1
jax: 0.10.0
libtpu: 0.0.40
codegen_flags: <defaults>
</compile_context>

<pallas_src>
import jax
import jax.numpy as jnp
from jax.experimental import pallas as pl
from jax.experimental.pallas import tpu as pltpu

LANE = 128        # TPU lane width; classifier head is padded to this for dense stores.
NEG_INF = -1e30   # pad value for the classifier bias -> exp(pad) == 0 in log-softmax.


def _round_up(x, m):
    return (x + m - 1) // m * m


# ---------------------------------------------------------------------------
# Kernel: one batch tile through the whole MLP.  Weights stay VMEM-resident.
# ---------------------------------------------------------------------------
def combined_classifier_kernel(x_ref, w1_ref, b1_ref, w2_ref, b2_ref,
                               wh_ref, bh_ref, ws_ref, bs_ref, out_ref):
    # x arrives in its native f32; cast to bf16 in-register for the MXU so the
    # wrapper never needs a separate HBM cast pass over the activations.
    x = x_ref[...].astype(jnp.bfloat16)                                 # [TB, n_outer]

    # l1 + sigmoid (bf16 MXU operands, f32 accumulation + activation math)
    h1 = jnp.dot(x, w1_ref[...], preferred_element_type=jnp.float32) + b1_ref[...]
    h1 = jax.nn.sigmoid(h1)                                             # [TB, n_hid1_l1]

    # l2 + sigmoid
    h2 = jnp.dot(h1.astype(jnp.bfloat16), w2_ref[...],
                 preferred_element_type=jnp.float32) + b2_ref[...]
    h2 = jax.nn.sigmoid(h2)                                             # [TB, n_hid1_l2]

    # hid1 + leaky_relu (slope 0.01, PyTorch default)
    h3 = jnp.dot(h2.astype(jnp.bfloat16), wh_ref[...],
                 preferred_element_type=jnp.float32) + bh_ref[...]
    h3 = jnp.where(h3 > 0, h3, 0.01 * h3)                               # [TB, n_hid_sm]

    # Sm_lin (lane-padded to 128 classes) + LogSoftmax(dim=1).
    # Padded weight columns are zero and padded bias columns are -1e30, so the
    # padded logits contribute exp(-1e30) == 0 to the normalizer.
    logits = jnp.dot(h3.astype(jnp.bfloat16), ws_ref[...],
                     preferred_element_type=jnp.float32) + bs_ref[...]  # [TB, 128]
    m = jnp.max(logits, axis=-1, keepdims=True)
    z = logits - m
    lse = jnp.log(jnp.sum(jnp.exp(z), axis=-1, keepdims=True))
    out_ref[...] = (z - lse).astype(out_ref.dtype)                      # [TB, 128]


# ---------------------------------------------------------------------------
# Wrapper: flatten NCHW (no cast, no pad), prep params, tile the batch.
# ---------------------------------------------------------------------------
def combined_classifier_hl(x_nchw, params, *, tb=1024,
                           out_dtype=jnp.float32, full_output=False):
    n = x_nchw.shape[0]
    n_outer = params["w1"].shape[0]
    n_classes = params["ws"].shape[1]
    assert n_classes <= LANE, "padding scheme assumes n_classes <= 128"

    # Flatten only (layout-compatible reshape): == torch .view(-1, n_outer).
    # No dtype cast and no batch pad here -> no extra HBM pass over x.
    x2d = x_nchw.reshape(n, -1)
    assert x2d.shape[1] == n_outer

    # --- parameter prep: bf16 MXU weights, f32 biases, lane-padded head -----
    pad_c = LANE - n_classes
    w1 = params["w1"].astype(jnp.bfloat16); b1 = params["b1"].astype(jnp.float32)
    w2 = params["w2"].astype(jnp.bfloat16); b2 = params["b2"].astype(jnp.float32)
    wh = params["wh"].astype(jnp.bfloat16); bh = params["bh"].astype(jnp.float32)
    ws = jnp.pad(params["ws"].astype(jnp.bfloat16), ((0, 0), (0, pad_c)))
    bs = jnp.pad(params["bs"].astype(jnp.float32), ((0, 0), (0, pad_c)),
                 constant_values=NEG_INF)

    # --- batch tile selection -------------------------------------------------
    # * never larger than the batch
    # * when the batch is big enough, force >= 2 grid steps so both v7x TCs work
    # * round to 16-sublane granularity (bf16-friendly); tiny/ragged batches fall
    #   back to a single full-array block (block shape == array dims is always legal)
    tb = min(tb, n)
    if n >= 32:
        tb = min(tb, (n + 1) // 2)
    tb_r = _round_up(tb, 16)
    tb = tb_r if tb_r <= n else n
    grid = (pl.cdiv(n, tb),)          # ragged tail handled by partial boundary blocks

    def resident(shape):
        # Full-array block with a grid-invariant index map -> DMA'd once, VMEM-resident.
        # (Weights total ~0.6 MiB; default double-buffering overhead is negligible,
        #  so pl.Buffered(1) is not needed here.)
        return pl.BlockSpec(shape, lambda i: (0, 0))

    out_full = pl.pallas_call(
        combined_classifier_kernel,
        out_shape=jax.ShapeDtypeStruct((n, LANE), out_dtype),
        grid=grid,
        in_specs=[
            pl.BlockSpec((tb, n_outer), lambda i: (i, 0)),   # x: batch-tiled, pipelined
            resident(w1.shape), resident(b1.shape),
            resident(w2.shape), resident(b2.shape),
            resident(wh.shape), resident(bh.shape),
            resident(ws.shape), resident(bs.shape),
        ],
        out_specs=pl.BlockSpec((tb, LANE), lambda i: (i, 0)),
        compiler_params=pltpu.CompilerParams(
            dimension_semantics=("parallel",),               # shard batch tiles over TCs
            vmem_limit_bytes=40 * 1024 * 1024,               # headroom under v7x 64 MiB/TC
        ),
    )(x2d, w1, b1, w2, b2, wh, bh, ws, bs)

    if full_output:
        return out_full                  # [N, 128]; caller slices/fuses the class dim
    return out_full[:, :n_classes]       # PyTorch-shaped [N, n_classes]


# ---------------------------------------------------------------------------
# Pure-JAX reference (f32 everywhere) for correctness check.
# ---------------------------------------------------------------------------
def reference_forward(x_nchw, params):
    x = x_nchw.reshape(x_nchw.shape[0], -1).astype(jnp.float32)
    h = jax.nn.sigmoid(x @ params["w1"] + params["b1"])
    h = jax.nn.sigmoid(h @ params["w2"] + params["b2"])
    h = h @ params["wh"] + params["bh"]
    h = jnp.where(h > 0, h, 0.01 * h)
    logits = h @ params["ws"] + params["bs"]
    return jax.nn.log_softmax(logits, axis=-1)


# ---------------------------------------------------------------------------
# Deterministic parameter init (PyTorch nn.Linear-style uniform(-1/sqrt(fan_in))).
# Weights stored as [in, out] (pre-transposed relative to torch's [out, in]).
# ---------------------------------------------------------------------------
def init_params(key, n_outer, n_hid1_l1, n_hid1_l2, n_hid_sm, n_classes):
    dims = [(n_outer, n_hid1_l1), (n_hid1_l1, n_hid1_l2),
            (n_hid1_l2, n_hid_sm), (n_hid_sm, n_classes)]
    names = ["1", "2", "h", "s"]
    params = {}
    for (fan_in, fan_out), nm in zip(dims, names):
        key, kw, kb = jax.random.split(key, 3)
        bound = 1.0 / jnp.sqrt(fan_in)
        params["w" + nm] = jax.random.uniform(
            kw, (fan_in, fan_out), jnp.float32, -bound, bound)
        params["b" + nm] = jax.random.uniform(
            kb, (1, fan_out), jnp.float32, -bound, bound)   # (1, out) for broadcast
    return params


if __name__ == "__main__":
    # Small shapes consistent with the module:
    #   l1_model: n_outer = 4*16*16 = 1024, n_hid1 = 256
    #   l2_model: n_outer = 256,            n_hid1 = 128
    #   sm_model: n_in = 128, n_hid = 64, n_classes = 10
    C, H, W = 4, 16, 16
    n_outer, n_hid1_l1, n_hid1_l2, n_hid_sm, n_classes = C * H * W, 256, 128, 64, 10

    key = jax.random.PRNGKey(0)
    key, kx1, kx2 = jax.random.split(key, 3)
    params = init_params(key, n_outer, n_hid1_l1, n_hid1_l2, n_hid_sm, n_classes)

    # jit the wrapper so the reshape / weight prep / class-slice fuse with
    # neighbouring XLA ops instead of running as standalone HBM passes.
    fwd = jax.jit(combined_classifier_hl)

    # Case 1: tiny batch (single full-array block path).
    B1 = 2
    x1 = jax.random.normal(kx1, (B1, C, H, W), jnp.float32)
    out1 = jax.block_until_ready(fwd(x1, params))
    assert out1.shape == (B1, n_classes)
    assert jnp.allclose(jnp.sum(jnp.exp(out1), axis=-1), 1.0, atol=1e-4)
    ref1 = reference_forward(x1, params)
    assert jnp.allclose(out1, ref1, atol=5e-2), float(jnp.max(jnp.abs(out1 - ref1)))

    # Case 2: multi-tile batch with a ragged tail (2 grid steps, partial last block).
    B2 = 50
    x2 = jax.random.normal(kx2, (B2, C, H, W), jnp.float32)
    out2 = jax.block_until_ready(fwd(x2, params))
    assert out2.shape == (B2, n_classes)
    assert jnp.allclose(jnp.sum(jnp.exp(out2), axis=-1), 1.0, atol=1e-4)
    ref2 = reference_forward(x2, params)
    assert jnp.allclose(out2, ref2, atol=5e-2), float(jnp.max(jnp.abs(out2 - ref2)))

    print("KERNEL_OK")
</pallas_src>

<mosaic_0001>
module attributes {stable_mosaic.version = 11 : i64} {
  func.func @combined_classifier_kernel(%arg0: i32, %arg1: memref<2x1024xf32, #tpu.memory_space<vmem>>, %arg2: memref<1024x256xbf16, #tpu.memory_space<vmem>>, %arg3: memref<1x256xf32, #tpu.memory_space<vmem>>, %arg4: memref<256x128xbf16, #tpu.memory_space<vmem>>, %arg5: memref<1x128xf32, #tpu.memory_space<vmem>>, %arg6: memref<128x64xbf16, #tpu.memory_space<vmem>>, %arg7: memref<1x64xf32, #tpu.memory_space<vmem>>, %arg8: memref<64x128xbf16, #tpu.memory_space<vmem>>, %arg9: memref<1x128xf32, #tpu.memory_space<vmem>>, %arg10: memref<2x128xf32, #tpu.memory_space<vmem>>) attributes {dimension_semantics = [#tpu.dimension_semantics<parallel>], iteration_bounds = array<i64: 1>, scalar_prefetch = 0 : i64, scratch_operands = 0 : i64, tpu.core_type = #tpu.core_type<tc>, window_params = [{transform_indices = @transform_0, window_bounds = array<i64: 2, 1024>}, {pipeline_mode = #tpu.pipeline_mode<synchronous>, transform_indices = @transform_1, window_bounds = array<i64: 1024, 256>}, {pipeline_mode = #tpu.pipeline_mode<synchronous>, transform_indices = @transform_2, window_bounds = array<i64: 1, 256>}, {pipeline_mode = #tpu.pipeline_mode<synchronous>, transform_indices = @transform_3, window_bounds = array<i64: 256, 128>}, {pipeline_mode = #tpu.pipeline_mode<synchronous>, transform_indices = @transform_4, window_bounds = array<i64: 1, 128>}, {pipeline_mode = #tpu.pipeline_mode<synchronous>, transform_indices = @transform_5, window_bounds = array<i64: 128, 64>}, {pipeline_mode = #tpu.pipeline_mode<synchronous>, transform_indices = @transform_6, window_bounds = array<i64: 1, 64>}, {pipeline_mode = #tpu.pipeline_mode<synchronous>, transform_indices = @transform_7, window_bounds = array<i64: 64, 128>}, {pipeline_mode = #tpu.pipeline_mode<synchronous>, transform_indices = @transform_8, window_bounds = array<i64: 1, 128>}, {transform_indices = @transform_9, window_bounds = array<i64: 2, 128>}]} {
    %c0 = arith.constant 0 : index
    %c0_0 = arith.constant 0 : index
    %0 = vector.load %arg1[%c0, %c0_0] : memref<2x1024xf32, #tpu.memory_space<vmem>>, vector<2x1024xf32>
    %1 = arith.truncf %0 : vector<2x1024xf32> to vector<2x1024xbf16>
    %c0_1 = arith.constant 0 : index
    %c0_2 = arith.constant 0 : index
    %2 = vector.load %arg2[%c0_1, %c0_2] : memref<1024x256xbf16, #tpu.memory_space<vmem>>, vector<1024x256xbf16>
    %cst = arith.constant dense<0.000000e+00> : vector<2x256xf32>
    %3 = tpu.matmul %1, %2, %cst {dimension_numbers = #tpu.dot_dimension_numbers<[1], [0], [0], [1], [0, 0, 1, 1], [], []>} : vector<2x1024xbf16>, vector<1024x256xbf16>, vector<2x256xf32> -> vector<2x256xf32>
    %c0_3 = arith.constant 0 : index
    %c0_4 = arith.constant 0 : index
    %4 = vector.load %arg3[%c0_3, %c0_4] : memref<1x256xf32, #tpu.memory_space<vmem>>, vector<1x256xf32>
    %5 = vector.broadcast %4 : vector<1x256xf32> to vector<2x256xf32>
    %6 = arith.addf %3, %5 : vector<2x256xf32>
    %7 = arith.negf %6 : vector<2x256xf32>
    %8 = math.exp %7 : vector<2x256xf32>
    %cst_5 = arith.constant 1.000000e+00 : f32
    %9 = vector.broadcast %cst_5 : f32 to vector<2x256xf32>
    %10 = arith.addf %9, %8 : vector<2x256xf32>
    %11 = arith.divf %9, %10 : vector<2x256xf32>
    %12 = arith.truncf %11 : vector<2x256xf32> to vector<2x256xbf16>
    %c0_6 = arith.constant 0 : index
    %c0_7 = arith.constant 0 : index
    %13 = vector.load %arg4[%c0_6, %c0_7] : memref<256x128xbf16, #tpu.memory_space<vmem>>, vector<256x128xbf16>
    %cst_8 = arith.constant dense<0.000000e+00> : vector<2x128xf32>
    %14 = tpu.matmul %12, %13, %cst_8 {dimension_numbers = #tpu.dot_dimension_numbers<[1], [0], [0], [1], [0, 0, 1, 1], [], []>} : vector<2x256xbf16>, vector<256x128xbf16>, vector<2x128xf32> -> vector<2x128xf32>
    %c0_9 = arith.constant 0 : index
    %c0_10 = arith.constant 0 : index
    %15 = vector.load %arg5[%c0_9, %c0_10] : memref<1x128xf32, #tpu.memory_space<vmem>>, vector<1x128xf32>
    %16 = vector.broadcast %15 : vector<1x128xf32> to vector<2x128xf32>
    %17 = arith.addf %14, %16 : vector<2x128xf32>
    %18 = arith.negf %17 : vector<2x128xf32>
    %19 = math.exp %18 : vector<2x128xf32>
    %cst_11 = arith.constant 1.000000e+00 : f32
    %20 = vector.broadcast %cst_11 : f32 to vector<2x128xf32>
    %21 = arith.addf %20, %19 : vector<2x128xf32>
    %22 = arith.divf %20, %21 : vector<2x128xf32>
    %23 = arith.truncf %22 : vector<2x128xf32> to vector<2x128xbf16>
    %c0_12 = arith.constant 0 : index
    %c0_13 = arith.constant 0 : index
    %24 = vector.load %arg6[%c0_12, %c0_13] : memref<128x64xbf16, #tpu.memory_space<vmem>>, vector<128x64xbf16>
    %cst_14 = arith.constant dense<0.000000e+00> : vector<2x64xf32>
    %25 = tpu.matmul %23, %24, %cst_14 {dimension_numbers = #tpu.dot_dimension_numbers<[1], [0], [0], [1], [0, 0, 1, 1], [], []>} : vector<2x128xbf16>, vector<128x64xbf16>, vector<2x64xf32> -> vector<2x64xf32>
    %c0_15 = arith.constant 0 : index
    %c0_16 = arith.constant 0 : index
    %26 = vector.load %arg7[%c0_15, %c0_16] : memref<1x64xf32, #tpu.memory_space<vmem>>, vector<1x64xf32>
    %27 = vector.broadcast %26 : vector<1x64xf32> to vector<2x64xf32>
    %28 = arith.addf %25, %27 : vector<2x64xf32>
    %cst_17 = arith.constant 0.000000e+00 : f32
    %29 = vector.broadcast %cst_17 : f32 to vector<2x64xf32>
    %30 = arith.cmpf ogt, %28, %29 : vector<2x64xf32>
    %cst_18 = arith.constant 0.00999999977 : f32
    %31 = vector.broadcast %cst_18 : f32 to vector<2x64xf32>
    %32 = arith.mulf %31, %28 : vector<2x64xf32>
    %33 = arith.select %30, %28, %32 : vector<2x64xi1>, vector<2x64xf32>
    %34 = arith.truncf %33 : vector<2x64xf32> to vector<2x64xbf16>
    %c0_19 = arith.constant 0 : index
    %c0_20 = arith.constant 0 : index
    %35 = vector.load %arg8[%c0_19, %c0_20] : memref<64x128xbf16, #tpu.memory_space<vmem>>, vector<64x128xbf16>
    %cst_21 = arith.constant dense<0.000000e+00> : vector<2x128xf32>
    %36 = tpu.matmul %34, %35, %cst_21 {dimension_numbers = #tpu.dot_dimension_numbers<[1], [0], [0], [1], [0, 0, 1, 1], [], []>} : vector<2x64xbf16>, vector<64x128xbf16>, vector<2x128xf32> -> vector<2x128xf32>
    %c0_22 = arith.constant 0 : index
    %c0_23 = arith.constant 0 : index
    %37 = vector.load %arg9[%c0_22, %c0_23] : memref<1x128xf32, #tpu.memory_space<vmem>>, vector<1x128xf32>
    %38 = vector.broadcast %37 : vector<1x128xf32> to vector<2x128xf32>
    %39 = arith.addf %36, %38 : vector<2x128xf32>
    %cst_24 = arith.constant dense<0xFF800000> : vector<2xf32>
    %40 = vector.multi_reduction <maximumf>, %39, %cst_24 [1] : vector<2x128xf32> to vector<2xf32>
    %41 = vector.shape_cast %40 : vector<2xf32> to vector<2x1xf32>
    %42 = vector.broadcast %41 : vector<2x1xf32> to vector<2x128xf32>
    %43 = arith.subf %39, %42 : vector<2x128xf32>
    %44 = math.exp %43 : vector<2x128xf32>
    %cst_25 = arith.constant dense<0.000000e+00> : vector<2xf32>
    %45 = vector.multi_reduction <add>, %44, %cst_25 [1] : vector<2x128xf32> to vector<2xf32>
    %46 = vector.shape_cast %45 : vector<2xf32> to vector<2x1xf32>
    %47 = math.log %46 : vector<2x1xf32>
    %48 = vector.broadcast %47 : vector<2x1xf32> to vector<2x128xf32>
    %49 = arith.subf %43, %48 : vector<2x128xf32>
    %c0_26 = arith.constant 0 : index
    %c0_27 = arith.constant 0 : index
    %50 = vector.load %arg10[%c0_26, %c0_27] : memref<2x128xf32, #tpu.memory_space<vmem>>, vector<2x128xf32>
    tpu.vector_store %arg10[%c0_26, %c0_27], %49 {strides = array<i32>} : memref<2x128xf32, #tpu.memory_space<vmem>>, vector<2x128xf32>,
    return
  }
  func.func @transform_0(%arg0: i32) -> (i32, i32) {
    %c0_i32 = arith.constant 0 : i32
    %c0_i32_0 = arith.constant 0 : i32
    return %arg0, %c0_i32 : i32, i32
  }
  func.func @transform_1(%arg0: i32) -> (i32, i32) {
    %c0_i32 = arith.constant 0 : i32
    %c0_i32_0 = arith.constant 0 : i32
    %c0_i32_1 = arith.constant 0 : i32
    return %c0_i32, %c0_i32_0 : i32, i32
  }
  func.func @transform_2(%arg0: i32) -> (i32, i32) {
    %c0_i32 = arith.constant 0 : i32
    %c0_i32_0 = arith.constant 0 : i32
    %c0_i32_1 = arith.constant 0 : i32
    return %c0_i32, %c0_i32_0 : i32, i32
  }
  func.func @transform_3(%arg0: i32) -> (i32, i32) {
    %c0_i32 = arith.constant 0 : i32
    %c0_i32_0 = arith.constant 0 : i32
    %c0_i32_1 = arith.constant 0 : i32
    return %c0_i32, %c0_i32_0 : i32, i32
  }
  func.func @transform_4(%arg0: i32) -> (i32, i32) {
    %c0_i32 = arith.constant 0 : i32
    %c0_i32_0 = arith.constant 0 : i32
    %c0_i32_1 = arith.constant 0 : i32
    return %c0_i32, %c0_i32_0 : i32, i32
  }
  func.func @transform_5(%arg0: i32) -> (i32, i32) {
    %c0_i32 = arith.constant 0 : i32
    %c0_i32_0 = arith.constant 0 : i32
    %c0_i32_1 = arith.constant 0 : i32
    return %c0_i32, %c0_i32_0 : i32, i32
  }
  func.func @transform_6(%arg0: i32) -> (i32, i32) {
    %c0_i32 = arith.constant 0 : i32
    %c0_i32_0 = arith.constant 0 : i32
    %c0_i32_1 = arith.constant 0 : i32
    return %c0_i32, %c0_i32_0 : i32, i32
  }
  func.func @transform_7(%arg0: i32) -> (i32, i32) {
    %c0_i32 = arith.constant 0 : i32
    %c0_i32_0 = arith.constant 0 : i32
    %c0_i32_1 = arith.constant 0 : i32
    return %c0_i32, %c0_i32_0 : i32, i32
  }
  func.func @transform_8(%arg0: i32) -> (i32, i32) {
    %c0_i32 = arith.constant 0 : i32
    %c0_i32_0 = arith.constant 0 : i32
    %c0_i32_1 = arith.constant 0 : i32
    return %c0_i32, %c0_i32_0 : i32, i32
  }
  func.func @transform_9(%arg0: i32) -> (i32, i32) {
    %c0_i32 = arith.constant 0 : i32
    %c0_i32_0 = arith.constant 0 : i32
    return %arg0, %c0_i32 : i32, i32
  }
}

</mosaic_0001>

<bundles_post_ra>
// kernel: combined_classifier_hl.1
= control target key start
LH: loop header
LB: loop body
LE: loop exit
PB: predicated region body
PF: predicated region fallthrough
CT: control target
= control target key end

     0   :  { %v1963_v9 = vmov 1983009808   ;;  %v42_v11 = vlaneseq  ;;  %s2557_s0 = inlined_call_operand.vmem [shape: f32[2,1024], index: 0, kind: input, shape index: {}]   ;;  %s2558_s1 = inlined_call_operand.vmem [shape: bf16[1024,256], index: 1, kind: input, shape index: {}]   ;;  %s2559_s2 = inlined_call_operand.vmem [shape: f32[1,256], index: 2, kind: input, shape index: {}]   ;;  %s2560_s3 = inlined_call_operand.vmem [shape: bf16[256,128], index: 3, kind: input, shape index: {}]   ;;  %s2561_s4 = inlined_call_operand.vmem [shape: f32[1,128], index: 4, kind: input, shape index: {}]   ;;  %s2562_s5 = inlined_call_operand.vmem [shape: bf16[128,64], index: 5, kind: input, shape index: {}]   ;;  %s2563_s6 = inlined_call_operand.vmem [shape: f32[1,64], index: 6, kind: input, shape index: {}]   ;;  %s2564_s7 = inlined_call_operand.vmem [shape: bf16[64,128], index: 7, kind: input, shape index: {}]   ;;  %s2565_s8 = inlined_call_operand.vmem [shape: f32[1,128], index: 8, kind: input, shape index: {}]   ;;  %s2566_s9 = inlined_call_operand.hbm [shape: f32[2,128], index: 9, kind: output, shape index: {}]  }
   0x1   :  { %v1701_v0 = vld [vmem:[%s2558_s1 + $0x104] ss:$8 sps:$4 sm:$0xff]   ;;  %v1703_v1 = vld [vmem:[%s2558_s1 + $0x100] ss:$8 sps:$4 sm:$0xff]   ;;  %v1704_v2 = vld [vmem:[%s2558_s1 + $0x114] ss:$8 sps:$4 sm:$0xff]   ;;  %v40_v10 = vunpack.c.l.s4 %v1963_v9 }
   0x2   :  { %909 = vmatprep.subr.bf16.mxu0 %v1701_v0  ;;  %v1706_v3 = vld [vmem:[%s2558_s1 + $0x110] ss:$8 sps:$4 sm:$0xff]   ;;  %v1707_v4 = vld [vmem:[%s2558_s1 + $0x124] ss:$8 sps:$4 sm:$0xff]   ;;  %v1709_v5 = vld [vmem:[%s2558_s1 + $0x120] ss:$8 sps:$4 sm:$0xff]  }
   0x3   :  { %910 = vmatpush1.bf16.msra.mxu0 %v1703_v1  ;;  %v1710_v6 = vld [vmem:[%s2558_s1 + $0x134] ss:$8 sps:$4 sm:$0xff]   ;;  %v1712_v7 = vld [vmem:[%s2558_s1 + $0x130] ss:$8 sps:$4 sm:$0xff]   ;;  %v1713_v8 = vld [vmem:[%s2558_s1 + $0x144] ss:$8 sps:$4 sm:$0xff]   ;;  %v41_v14 = vunpack.c.0.s8 %v40_v10 }
   0x4   :  { %911 = vmatprep.subr.bf16.mxu0 %v1704_v2  ;;  %v1715_v12 = vld [vmem:[%s2558_s1 + $0x140] ss:$8 sps:$4 sm:$0xff]   ;;  %v1716_v13 = vld [vmem:[%s2558_s1 + $0x154] ss:$8 sps:$4 sm:$0xff]   ;;  %v2050_v15 = vshrl.u32 %v42_v11, 7 }
   0x5   :  { %v1718_v16 = vld [vmem:[%s2558_s1 + $0x150] ss:$8 sps:$4 sm:$0xff]   ;;  %v1719_v17 = vld [vmem:[%s2558_s1 + $0x164] ss:$8 sps:$4 sm:$0xff]   ;;  %v1721_v21 = vld [vmem:[%s2558_s1 + $0x160] ss:$8 sps:$4 sm:$0xff]  }
   0x6   :  { %v2059_v18 = vsub.s32 %v41_v14, %v2050_v15  ;;  %v34_v19 = vld [vmem:[%s2557_s0] sm:$0xff]  ;;  %v1722_v22 = vld [vmem:[%s2558_s1 + $0x174] ss:$8 sps:$4 sm:$0xff]   ;;  %v1724_v25 = vld [vmem:[%s2558_s1 + $0x170] ss:$8 sps:$4 sm:$0xff]  }
   0x7   :  { %912 = vmatpush1.bf16.msra.mxu0 %v1706_v3  ;;  %v38_v20 = vcombine.high %v34_v19, %v34_v19  ;;  %v1725_v26 = vld [vmem:[%s2558_s1 + $0x184] ss:$8 sps:$4 sm:$0xff]   ;;  %v1727_v28 = vld [vmem:[%s2558_s1 + $0x180] ss:$8 sps:$4 sm:$0xff]   ;;  %v1728_v29 = vld [vmem:[%s2558_s1 + $0x194] ss:$8 sps:$4 sm:$0xff]  }
   0x8   :  { %913 = vmatprep.subr.bf16.mxu0 %v1707_v4  ;;  %v1730_v30 = vld [vmem:[%s2558_s1 + $0x190] ss:$8 sps:$4 sm:$0xff]   ;;  %v1731_v31 = vld [vmem:[%s2558_s1 + $0x1a4] ss:$8 sps:$4 sm:$0xff]   ;;  %v1733_v32 = vld [vmem:[%s2558_s1 + $0x1a0] ss:$8 sps:$4 sm:$0xff]   ;;  %v2150_v50 = vrot.slane %v34_v19, %v2059_v18 }
   0x9   :  { %v2071_v23 = vrot.slane %v38_v20, %v2059_v18  ;;  %v1734_v33 = vld [vmem:[%s2558_s1 + $0x1b4] ss:$8 sps:$4 sm:$0xff]   ;;  %v1795_v34 = vld [vmem:[%s2558_s1 + $0x4] ss:$8 sps:$4 sm:$0xff]   ;;  %v1797_v35 = vld [vmem:[%s2558_s1] ss:$8 sps:$4 sm:$0xff]  }
   0xa   :  { %v1736_v36 = vld [vmem:[%s2558_s1 + $0x1b0] ss:$8 sps:$4 sm:$0xff]   ;;  %v1737_v37 = vld [vmem:[%s2558_s1 + $0x1c4] ss:$8 sps:$4 sm:$0xff]   ;;  %868 = vmatprep.subr.bf16.mxu1 %v1795_v34  ;;  %v1801_v38 = vld [vmem:[%s2558_s1 + $0x14] ss:$8 sps:$4 sm:$0xff]   ;;  %v53_v54 = vcombine.high %v2150_v50, %v2150_v50 }
   0xb   :  { %914 = vmatpush1.bf16.msra.mxu0 %v1709_v5  ;;  %v54_v24 = vcombine.high %v2071_v23, %v2071_v23  ;;  %869 = vmatpush1.bf16.msra.mxu1 %v1797_v35  ;;  %v1803_v39 = vld [vmem:[%s2558_s1 + $0x10] ss:$8 sps:$4 sm:$0xff]   ;;  %v1739_v40 = vld [vmem:[%s2558_s1 + $0x1c0] ss:$8 sps:$4 sm:$0xff]   ;;  %v1740_v41 = vld [vmem:[%s2558_s1 + $0x1d4] ss:$8 sps:$4 sm:$0xff]   ;;  %v82_v62 = vpack.c.bf16 %v2071_v23, %v2071_v23 }
   0xc   :  { %915 = vmatprep.subr.bf16.mxu0 %v1710_v6  ;;  %870 = vmatprep.subr.bf16.mxu1 %v1801_v38  ;;  %v1807_v42 = vld [vmem:[%s2558_s1 + $0x24] ss:$8 sps:$4 sm:$0xff]   ;;  %v1809_v43 = vld [vmem:[%s2558_s1 + $0x20] ss:$8 sps:$4 sm:$0xff]   ;;  %v1813_v44 = vld [vmem:[%s2558_s1 + $0x34] ss:$8 sps:$4 sm:$0xff]   ;;  %v81_v57 = vpack.c.bf16 %v53_v54, %v53_v54 }
   0xd   :  { %v83_v27 = vpack.c.bf16 %v54_v24, %v54_v24  ;;  %v1742_v45 = vld [vmem:[%s2558_s1 + $0x1d0] ss:$8 sps:$4 sm:$0xff]   ;;  %v1743_v46 = vld [vmem:[%s2558_s1 + $0x1e4] ss:$8 sps:$4 sm:$0xff]   ;;  %v1745_v51 = vld [vmem:[%s2558_s1 + $0x1e0] ss:$8 sps:$4 sm:$0xff]  }
   0xe   :  { %v2141_v47 = vld [vmem:[%s2557_s0 + $0x8] sm:$0xff]  ;;  %v1815_v48 = vld [vmem:[%s2558_s1 + $0x30] ss:$8 sps:$4 sm:$0xff]   ;;  %v1746_v53 = vld [vmem:[%s2558_s1 + $0x1f4] ss:$8 sps:$4 sm:$0xff]   ;;  %900 = vmatprep.mubr.bf16.mxu1 %v81_v57 }
   0xf   :  { %916 = vmatpush1.bf16.msra.mxu0 %v1712_v7  ;;  %941 = vmatprep.mubr.bf16.mxu0 %v83_v27  ;;  %v1819_v49 = vld [vmem:[%s2558_s1 + $0x44] ss:$8 sps:$4 sm:$0xff]   ;;  %v2157_v52 = vrot.slane %v2141_v47, %v2059_v18  ;;  %v1821_v55 = vld [vmem:[%s2558_s1 + $0x40] ss:$8 sps:$4 sm:$0xff]   ;;  %v1825_v56 = vld [vmem:[%s2558_s1 + $0x54] ss:$8 sps:$4 sm:$0xff]  }
  0x10   :  { %917 = vmatprep.subr.bf16.mxu0 %v1713_v8  ;;  %871 = vmatpush1.bf16.msra.mxu1 %v1803_v39  ;;  %v1748_v58 = vld [vmem:[%s2558_s1 + $0x1f0] ss:$8 sps:$4 sm:$0xff]   ;;  %v1752_v60 = vld [vmem:[%s2558_s1 + $0x204] ss:$8 sps:$4 sm:$0xff]   ;;  %v1750_v0 = vld [vmem:[%s2558_s1 + $0x200] ss:$8 sps:$4 sm:$0xff]  }
  0x11   :  { %872 = vmatprep.subr.bf16.mxu1 %v1807_v42  ;;  %v70_v59 = vcombine.high %v2157_v52, %v2157_v52  ;;  %v1827_v61 = vld [vmem:[%s2558_s1 + $0x50] ss:$8 sps:$4 sm:$0xff]   ;;  %v1831_v63 = vld [vmem:[%s2558_s1 + $0x64] ss:$8 sps:$4 sm:$0xff]   ;;  %v1755_v2 = vld [vmem:[%s2558_s1 + $0x214] ss:$8 sps:$4 sm:$0xff]  }
  0x12   :  { %v1833_v3 = vld [vmem:[%s2558_s1 + $0x60] ss:$8 sps:$4 sm:$0xff]   ;;  %v1837_v4 = vld [vmem:[%s2558_s1 + $0x74] ss:$8 sps:$4 sm:$0xff]   ;;  %v1753_v5 = vld [vmem:[%s2558_s1 + $0x210] ss:$8 sps:$4 sm:$0xff]  }
  0x13   :  { %918 = vmatpush1.bf16.msra.mxu0 %v1715_v12  ;;  %v85_v1 = vpack.c.bf16 %v70_v59, %v70_v59  ;;  %v1758_v6 = vld [vmem:[%s2558_s1 + $0x224] ss:$8 sps:$4 sm:$0xff]   ;;  %v1839_v7 = vld [vmem:[%s2558_s1 + $0x70] ss:$8 sps:$4 sm:$0xff]   ;;  %v1756_v9 = vld [vmem:[%s2558_s1 + $0x220] ss:$8 sps:$4 sm:$0xff]  }
  0x14   :  { %919 = vmatprep.subr.bf16.mxu0 %v1716_v13  ;;  %873 = vmatpush1.bf16.msra.mxu1 %v1809_v43  ;;  %v1843_v8 = vld [vmem:[%s2558_s1 + $0x84] ss:$8 sps:$4 sm:$0xff]   ;;  %v1761_v10 = vld [vmem:[%s2558_s1 + $0x234] ss:$8 sps:$4 sm:$0xff]   ;;  %v1845_v11 = vld [vmem:[%s2558_s1 + $0x80] ss:$8 sps:$4 sm:$0xff]  }
  0x15   :  { %874 = vmatprep.subr.bf16.mxu1 %v1813_v44  ;;  %v1849_v12 = vld [vmem:[%s2558_s1 + $0x94] ss:$8 sps:$4 sm:$0xff]   ;;  %v1759_v13 = vld [vmem:[%s2558_s1 + $0x230] ss:$8 sps:$4 sm:$0xff]   ;;  %v1764_v14 = vld [vmem:[%s2558_s1 + $0x244] ss:$8 sps:$4 sm:$0xff]   ;;  %v80_v44 = vpack.c.bf16 %v2150_v50, %v2150_v50 }
  0x16   :  { %v1762_v19 = vld [vmem:[%s2558_s1 + $0x240] ss:$8 sps:$4 sm:$0xff]   ;;  %v1767_v20 = vld [vmem:[%s2558_s1 + $0x254] ss:$8 sps:$4 sm:$0xff]   ;;  %v1765_v23 = vld [vmem:[%s2558_s1 + $0x250] ss:$8 sps:$4 sm:$0xff]  }
  0x17   :  { %920 = vmatpush1.bf16.msra.mxu0 %v1718_v16  ;;  %v1851_v16 = vld [vmem:[%s2558_s1 + $0x90] ss:$8 sps:$4 sm:$0xff]   ;;  %v1770_v24 = vld [vmem:[%s2558_s1 + $0x264] ss:$8 sps:$4 sm:$0xff]   ;;  %v1773_v27 = vld [vmem:[%s2558_s1 + $0x274] ss:$8 sps:$4 sm:$0xff]  }
  0x18   :  { %921 = vmatprep.subr.bf16.mxu0 %v1719_v17  ;;  %875 = vmatpush1.bf16.msra.mxu1 %v1815_v48  ;;  %v1855_v17 = vld [vmem:[%s2558_s1 + $0xa4] ss:$8 sps:$4 sm:$0xff]   ;;  %v1774_v35 = vld [vmem:[%s2558_s1 + $0x280] ss:$8 sps:$4 sm:$0xff]   ;;  %v1885_v38 = vld [vmem:[%s2558_s1 + $0xf4] ss:$8 sps:$4 sm:$0xff]  }
  0x19   :  { %876 = vmatprep.subr.bf16.mxu1 %v1819_v49  ;;  %v1879_v34 = vld [vmem:[%s2558_s1 + $0xe4] ss:$8 sps:$4 sm:$0xff]   ;;  %v1777_v39 = vld [vmem:[%s2558_s1 + $0x290] ss:$8 sps:$4 sm:$0xff]   ;;  %v1780_v42 = vld [vmem:[%s2558_s1 + $0x2a0] ss:$8 sps:$4 sm:$0xff]  }
  0x1a   :  { %v1785_v43 = vld [vmem:[%s2558_s1 + $0x2b4] ss:$8 sps:$4 sm:$0xff]  }
  0x1b   :  { %922 = vmatpush1.bf16.msra.mxu0 %v1721_v21  ;;  %v1857_v21 = vld [vmem:[%s2558_s1 + $0xa0] ss:$8 sps:$4 sm:$0xff]  }
  0x1c   :  { %923 = vmatprep.subr.bf16.mxu0 %v1722_v22  ;;  %877 = vmatpush1.bf16.msra.mxu1 %v1821_v55  ;;  %v1861_v22 = vld [vmem:[%s2558_s1 + $0xb4] ss:$8 sps:$4 sm:$0xff]  }
  0x1d   :  { %878 = vmatprep.subr.bf16.mxu1 %v1825_v56 }
  0x1f   :  { %924 = vmatpush1.bf16.msra.mxu0 %v1724_v25  ;;  %v1768_v25 = vld [vmem:[%s2558_s1 + $0x260] ss:$8 sps:$4 sm:$0xff]  }
  0x20   :  { %925 = vmatprep.subr.bf16.mxu0 %v1725_v26  ;;  %879 = vmatpush1.bf16.msra.mxu1 %v1827_v61  ;;  %v1863_v26 = vld [vmem:[%s2558_s1 + $0xb0] ss:$8 sps:$4 sm:$0xff]  }
  0x21   :  { %880 = vmatprep.subr.bf16.mxu1 %v1831_v63 }
  0x23   :  { %926 = vmatpush1.bf16.msra.mxu0 %v1727_v28  ;;  %v1867_v28 = vld [vmem:[%s2558_s1 + $0xc4] ss:$8 sps:$4 sm:$0xff]  }
  0x24   :  { %927 = vmatprep.subr.bf16.mxu0 %v1728_v29  ;;  %881 = vmatpush1.bf16.msra.mxu1 %v1833_v3  ;;  %v1869_v29 = vld [vmem:[%s2558_s1 + $0xc0] ss:$8 sps:$4 sm:$0xff]  }
  0x25   :  { %882 = vmatprep.subr.bf16.mxu1 %v1837_v4 }
  0x27   :  { %928 = vmatpush1.bf16.msra.mxu0 %v1730_v30  ;;  %v1873_v30 = vld [vmem:[%s2558_s1 + $0xd4] ss:$8 sps:$4 sm:$0xff]  }
  0x28   :  { %929 = vmatprep.subr.bf16.mxu0 %v1731_v31  ;;  %883 = vmatpush1.bf16.msra.mxu1 %v1839_v7  ;;  %v1771_v31 = vld [vmem:[%s2558_s1 + $0x270] ss:$8 sps:$4 sm:$0xff]  }
  0x29   :  { %884 = vmatprep.subr.bf16.mxu1 %v1843_v8 }
  0x2b   :  { %930 = vmatpush1.bf16.msra.mxu0 %v1733_v32  ;;  %v1776_v32 = vld [vmem:[%s2558_s1 + $0x284] ss:$8 sps:$4 sm:$0xff]  }
  0x2c   :  { %931 = vmatprep.subr.bf16.mxu0 %v1734_v33  ;;  %885 = vmatpush1.bf16.msra.mxu1 %v1845_v11  ;;  %v1875_v33 = vld [vmem:[%s2558_s1 + $0xd0] ss:$8 sps:$4 sm:$0xff]  }
  0x2d   :  { %886 = vmatprep.subr.bf16.mxu1 %v1849_v12 }
  0x2f   :  { %932 = vmatpush1.bf16.msra.mxu0 %v1736_v36  ;;  %v1779_v36 = vld [vmem:[%s2558_s1 + $0x294] ss:$8 sps:$4 sm:$0xff]  }
  0x30   :  { %933 = vmatprep.subr.bf16.mxu0 %v1737_v37  ;;  %887 = vmatpush1.bf16.msra.mxu1 %v1851_v16  ;;  %v1881_v37 = vld [vmem:[%s2558_s1 + $0xe0] ss:$8 sps:$4 sm:$0xff]  }
  0x31   :  { %888 = vmatprep.subr.bf16.mxu1 %v1855_v17 }
  0x33   :  { %934 = vmatpush1.bf16.msra.mxu0 %v1739_v40  ;;  %v1782_v40 = vld [vmem:[%s2558_s1 + $0x2a4] ss:$8 sps:$4 sm:$0xff]  }
  0x34   :  { %935 = vmatprep.subr.bf16.mxu0 %v1740_v41  ;;  %889 = vmatpush1.bf16.msra.mxu1 %v1857_v21  ;;  %v1887_v41 = vld [vmem:[%s2558_s1 + $0xf0] ss:$8 sps:$4 sm:$0xff]  }
  0x35   :  { %890 = vmatprep.subr.bf16.mxu1 %v1861_v22 }
  0x37   :  { %936 = vmatpush1.bf16.msra.mxu0 %v1742_v45 }
  0x38   :  { %937 = vmatprep.subr.bf16.mxu0 %v1743_v46  ;;  %891 = vmatpush1.bf16.msra.mxu1 %v1863_v26 }
  0x39   :  { %892 = vmatprep.subr.bf16.mxu1 %v1867_v28 }
  0x3b   :  { %938 = vmatpush1.bf16.msra.mxu0 %v1745_v51 }
  0x3c   :  { %939 = vmatprep.subr.bf16.mxu0 %v1746_v53  ;;  %893 = vmatpush1.bf16.msra.mxu1 %v1869_v29 }
  0x3d   :  { %894 = vmatprep.subr.bf16.mxu1 %v1873_v30 }
  0x3f   :  { %940 = vmatpush1.bf16.msra.mxu0 %v1748_v58 }
  0x40   :  { %950 = vmatprep.subr.bf16.mxu0 %v1752_v60  ;;  %895 = vmatpush1.bf16.msra.mxu1 %v1875_v33 }
  0x41   :  { %896 = vmatprep.subr.bf16.mxu1 %v1879_v34 }
  0x42   :  { %942 = vmatmul.mubr.bf16.vlgmr.msra.gmra.mrb[0].mxu0 %v82_v62 }
  0x43   :  { %951 = vmatpush1.bf16.msra.mxu0 %v1750_v0  ;;  %982 = vmatprep.mubr.bf16.mxu0 %v85_v1 }
  0x44   :  { %952 = vmatprep.subr.bf16.mxu0 %v1755_v2  ;;  %897 = vmatpush1.bf16.msra.mxu1 %v1881_v37 }
  0x45   :  { %898 = vmatprep.subr.bf16.mxu1 %v1885_v38 }
  0x47   :  { %953 = vmatpush1.bf16.msra.mxu0 %v1753_v5 }
  0x48   :  { %954 = vmatprep.subr.bf16.mxu0 %v1758_v6  ;;  %899 = vmatpush1.bf16.msra.mxu1 %v1887_v41 }
  0x4b   :  { %955 = vmatpush1.bf16.msra.mxu0 %v1756_v9 }
  0x4c   :  { %956 = vmatprep.subr.bf16.mxu0 %v1761_v10 }
  0x4f   :  { %957 = vmatpush1.bf16.msra.mxu0 %v1759_v13 }
  0x50   :  { %958 = vmatprep.subr.bf16.mxu0 %v1764_v14 }
  0x53   :  { %959 = vmatpush1.bf16.msra.mxu0 %v1762_v19 }
  0x54   :  { %960 = vmatprep.subr.bf16.mxu0 %v1767_v20 }
  0x57   :  { %961 = vmatpush1.bf16.msra.mxu0 %v1765_v23 }
  0x58   :  { %962 = vmatprep.subr.bf16.mxu0 %v1770_v24 }
  0x5b   :  { %963 = vmatpush1.bf16.msra.mxu0 %v1768_v25 }
  0x5c   :  { %964 = vmatprep.subr.bf16.mxu0 %v1773_v27 }
  0x5f   :  { %965 = vmatpush1.bf16.msra.mxu0 %v1771_v31 }
  0x60   :  { %966 = vmatprep.subr.bf16.mxu0 %v1776_v32 }
  0x63   :  { %967 = vmatpush1.bf16.msra.mxu0 %v1774_v35 }
  0x64   :  { %968 = vmatprep.subr.bf16.mxu0 %v1779_v36 }
  0x67   :  { %969 = vmatpush1.bf16.msra.mxu0 %v1777_v39 }
  0x68   :  { %970 = vmatprep.subr.bf16.mxu0 %v1782_v40 }
  0x69   :  { %14 = vsyncpa [#allocation3], 0  ;;  %v1783_v45 = vld [vmem:[%s2558_s1 + $0x2b0] ss:$8 sps:$4 sm:$0xff]   ;;  %v1788_v46 = vld [vmem:[%s2558_s1 + $0x2c4] ss:$8 sps:$4 sm:$0xff]   ;;  %901 = vmatmul.mubr.bf16.vlgmr.msra.gmra.mrb[0].mxu1 %v80_v44  ;;  %v55_v51 = vcombine.high %v2141_v47, %v2141_v47 }
  0x6a   :  { %v1786_v48 = vld [vmem:[%s2558_s1 + $0x2c0] ss:$8 sps:$4 sm:$0xff]   ;;  %v1791_v49 = vld [vmem:[%s2558_s1 + $0x2d4] ss:$8 sps:$4 sm:$0xff]   ;;  %v1789_v50 = vld [vmem:[%s2558_s1 + $0x2d0] ss:$8 sps:$4 sm:$0xff]  }
  0x6b   :  { %971 = vmatpush1.bf16.msra.mxu0 %v1780_v42  ;;  %v1794_v53 = vld [vmem:[%s2558_s1 + $0x2e4] ss:$8 sps:$4 sm:$0xff]   ;;  %v1792_v54 = vld [vmem:[%s2558_s1 + $0x2e0] ss:$8 sps:$4 sm:$0xff]   ;;  %v2335_v55 = vrot.slane %v55_v51, %v2059_v18  ;;  %v1800_v56 = vld [vmem:[%s2558_s1 + $0x2f4] ss:$8 sps:$4 sm:$0xff]   ;;  %v84_v18 = vpack.c.bf16 %v2157_v52, %v2157_v52 }
  0x6c   :  { %972 = vmatprep.subr.bf16.mxu0 %v1785_v43  ;;  %v1798_v47 = vld [vmem:[%s2558_s1 + $0x2f0] ss:$8 sps:$4 sm:$0xff]   ;;  %v1806_v58 = vld [vmem:[%s2558_s1 + $0x304] ss:$8 sps:$4 sm:$0xff]   ;;  %v1804_v59 = vld [vmem:[%s2558_s1 + $0x300] ss:$8 sps:$4 sm:$0xff]  }
  0x6d   :  { %v71_v57 = vcombine.high %v2335_v55, %v2335_v55  ;;  %v1812_v61 = vld [vmem:[%s2558_s1 + $0x314] ss:$8 sps:$4 sm:$0xff]   ;;  %v1810_v62 = vld [vmem:[%s2558_s1 + $0x310] ss:$8 sps:$4 sm:$0xff]   ;;  %v1818_v52 = vld [vmem:[%s2558_s1 + $0x324] ss:$8 sps:$4 sm:$0xff]   ;;  %v86_v28 = vpack.c.bf16 %v2335_v55, %v2335_v55 }
  0x6e   :  { %v1816_v63 = vld [vmem:[%s2558_s1 + $0x320] ss:$8 sps:$4 sm:$0xff]   ;;  %v1824_v0 = vld [vmem:[%s2558_s1 + $0x334] ss:$8 sps:$4 sm:$0xff]   ;;  %v1822_v1 = vld [vmem:[%s2558_s1 + $0x330] ss:$8 sps:$4 sm:$0xff]  }
  0x6f   :  { %973 = vmatpush1.bf16.msra.mxu0 %v1783_v45  ;;  %v87_v60 = vpack.c.bf16 %v71_v57, %v71_v57  ;;  %v1830_v2 = vld [vmem:[%s2558_s1 + $0x344] ss:$8 sps:$4 sm:$0xff]   ;;  %v1828_v3 = vld [vmem:[%s2558_s1 + $0x340] ss:$8 sps:$4 sm:$0xff]   ;;  %v1836_v4 = vld [vmem:[%s2558_s1 + $0x354] ss:$8 sps:$4 sm:$0xff]  }
  0x70   :  { %974 = vmatprep.subr.bf16.mxu0 %v1788_v46  ;;  %v1834_v5 = vld [vmem:[%s2558_s1 + $0x350] ss:$8 sps:$4 sm:$0xff]   ;;  %v1842_v6 = vld [vmem:[%s2558_s1 + $0x364] ss:$8 sps:$4 sm:$0xff]   ;;  %v1840_v7 = vld [vmem:[%s2558_s1 + $0x360] ss:$8 sps:$4 sm:$0xff]  }
  0x71   :  { %v1848_v8 = vld [vmem:[%s2558_s1 + $0x374] ss:$8 sps:$4 sm:$0xff]   ;;  %v1846_v9 = vld [vmem:[%s2558_s1 + $0x370] ss:$8 sps:$4 sm:$0xff]   ;;  %v1854_v10 = vld [vmem:[%s2558_s1 + $0x384] ss:$8 sps:$4 sm:$0xff]  }
  0x72   :  { %v1852_v11 = vld [vmem:[%s2558_s1 + $0x380] ss:$8 sps:$4 sm:$0xff]   ;;  %v1860_v12 = vld [vmem:[%s2558_s1 + $0x394] ss:$8 sps:$4 sm:$0xff]   ;;  %v1858_v13 = vld [vmem:[%s2558_s1 + $0x390] ss:$8 sps:$4 sm:$0xff]  }
  0x73   :  { %975 = vmatpush1.bf16.msra.mxu0 %v1786_v48  ;;  %v1866_v14 = vld [vmem:[%s2558_s1 + $0x3a4] ss:$8 sps:$4 sm:$0xff]   ;;  %v1864_v16 = vld [vmem:[%s2558_s1 + $0x3a0] ss:$8 sps:$4 sm:$0xff]   ;;  %v1872_v17 = vld [vmem:[%s2558_s1 + $0x3b4] ss:$8 sps:$4 sm:$0xff]  }
  0x74   :  { %976 = vmatprep.subr.bf16.mxu0 %v1791_v49  ;;  %v1870_v19 = vld [vmem:[%s2558_s1 + $0x3b0] ss:$8 sps:$4 sm:$0xff]   ;;  %v1878_v20 = vld [vmem:[%s2558_s1 + $0x3c4] ss:$8 sps:$4 sm:$0xff]   ;;  %v1876_v21 = vld [vmem:[%s2558_s1 + $0x3c0] ss:$8 sps:$4 sm:$0xff]  }
  0x75   :  { %v1884_v22 = vld [vmem:[%s2558_s1 + $0x3d4] ss:$8 sps:$4 sm:$0xff]   ;;  %v1882_v23 = vld [vmem:[%s2558_s1 + $0x3d0] ss:$8 sps:$4 sm:$0xff]   ;;  %v1890_v24 = vld [vmem:[%s2558_s1 + $0x3e4] ss:$8 sps:$4 sm:$0xff]  }
  0x76   :  { %v1888_v25 = vld [vmem:[%s2558_s1 + $0x3e0] ss:$8 sps:$4 sm:$0xff]   ;;  %v1893_v26 = vld [vmem:[%s2558_s1 + $0x3f4] ss:$8 sps:$4 sm:$0xff]   ;;  %v1891_v27 = vld [vmem:[%s2558_s1 + $0x3f0] ss:$8 sps:$4 sm:$0xff]  }
  0x77   :  { %977 = vmatpush1.bf16.msra.mxu0 %v1789_v50  ;;  %v1895_v29 = vld [vmem:[%s2560_s3 + $0x40] sm:$0xff]   ;;  %v1897_v31 = vld [vmem:[%s2560_s3 + $0x48] sm:$0xff]   ;;  %v1899_v33 = vld [vmem:[%s2560_s3 + $0x50] sm:$0xff]   ;;  %v220_v50 = vsub.s32 0, %v2050_v15  ;;  %vm1965_vm0 = vmmov 0   ;;  %vm1382_vm2 = vcmask 523264  }
  0x78   :  { %978 = vmatprep.subr.bf16.mxu0 %v1794_v53  ;;  %v1896_v30 = vld [vmem:[%s2560_s3] sm:$0xff]   ;;  %1617 = vmatprep.subr.bf16.mxu1 %v1895_v29  ;;  %v1898_v32 = vld [vmem:[%s2560_s3 + $0x8] sm:$0xff]   ;;  %v1900_v34 = vld [vmem:[%s2560_s3 + $0x10] sm:$0xff]   ;;  %v224_v53 = vsub.s32 1, %v2050_v15  ;;  %vm1426_vm3 = vcmask 1041408  }
  0x79   :  { %1618 = vmatpush3.bf16.msra.mxu1 %v1896_v30  ;;  %v1901_v35 = vld [vmem:[%s2560_s3 + $0x58] sm:$0xff]   ;;  %v1903_v37 = vld [vmem:[%s2560_s3 + $0x60] sm:$0xff]   ;;  %v1905_v39 = vld [vmem:[%s2560_s3 + $0x68] sm:$0xff]  }
  0x7a   :  { %1619 = vmatprep.subr.bf16.mxu1 %v1897_v31  ;;  %v1902_v36 = vld [vmem:[%s2560_s3 + $0x18] sm:$0xff]   ;;  %v1904_v38 = vld [vmem:[%s2560_s3 + $0x20] sm:$0xff]   ;;  %v1906_v40 = vld [vmem:[%s2560_s3 + $0x28] sm:$0xff]  }
  0x7b   :  { %979 = vmatpush1.bf16.msra.mxu0 %v1792_v54  ;;  %v1907_v41 = vld [vmem:[%s2560_s3 + $0x70] sm:$0xff]   ;;  %v1909_v43 = vld [vmem:[%s2560_s3 + $0x78] sm:$0xff]   ;;  %v216_v51 = vld [vmem:[%s2559_s2] sm:$0x3] }
  0x7c   :  { %980 = vmatprep.subr.bf16.mxu0 %v1800_v56  ;;  %v1908_v42 = vld [vmem:[%s2560_s3 + $0x30] sm:$0xff]   ;;  %v1910_v44 = vld [vmem:[%s2560_s3 + $0x38] sm:$0xff]   ;;  %v221_v54 = vrot.slane %v216_v51, %v220_v50  ;;  %v225_v55 = vrot.slane %v216_v51, %v224_v53  ;;  %v1920_v30 = vld [vmem:[%s2564_s7 + $0x8] sm:$0xff]  }
  0x7d   :  { %1620 = vmatpush3.bf16.msra.mxu1 %v1898_v32  ;;  %v1921_v31 = vld [vmem:[%s2564_s7 + $0x10] sm:$0xff]   ;;  %v1922_v32 = vld [vmem:[%s2564_s7 + $0x18] sm:$0xff]  }
  0x7e   :  { %1621 = vmatprep.subr.bf16.mxu1 %v1899_v33  ;;  %v1602_v33 = vld [vmem:[%s2563_s6] ss:$0 sm:$0xff]  ;;  %s1966_s6 = smov [#allocation2]  }
  0x7f   :  { %981 = vmatpush1.bf16.msra.mxu0 %v1798_v47 }
  0x80   :  { %991 = vmatprep.subr.bf16.mxu0 %v1806_v58 }
  0x81   :  { %1622 = vmatpush3.bf16.msra.mxu1 %v1900_v34 }
  0x82   :  { %983 = vmatmul.mubr.bf16.vlgmr.msra.gmra.mrb[0].mxu0 %v84_v18  ;;  %1623 = vmatprep.subr.bf16.mxu1 %v1901_v35 }
  0x83   :  { %992 = vmatpush1.bf16.msra.mxu0 %v1804_v59  ;;  %1023 = vmatprep.mubr.bf16.mxu0 %v87_v60 }
  0x84   :  { %993 = vmatprep.subr.bf16.mxu0 %v1812_v61 }
  0x85   :  { %1624 = vmatpush3.bf16.msra.mxu1 %v1902_v36 }
  0x86   :  { %1625 = vmatprep.subr.bf16.mxu1 %v1903_v37 }
  0x87   :  { %994 = vmatpush1.bf16.msra.mxu0 %v1810_v62 }
  0x88   :  { %995 = vmatprep.subr.bf16.mxu0 %v1818_v52 }
  0x89   :  { %1626 = vmatpush3.bf16.msra.mxu1 %v1904_v38 }
  0x8a   :  { %1627 = vmatprep.subr.bf16.mxu1 %v1905_v39 }
  0x8b   :  { %996 = vmatpush1.bf16.msra.mxu0 %v1816_v63 }
  0x8c   :  { %997 = vmatprep.subr.bf16.mxu0 %v1824_v0 }
  0x8d   :  { %1628 = vmatpush3.bf16.msra.mxu1 %v1906_v40 }
  0x8e   :  { %1629 = vmatprep.subr.bf16.mxu1 %v1907_v41 }
  0x8f   :  { %998 = vmatpush1.bf16.msra.mxu0 %v1822_v1 }
  0x90   :  { %999 = vmatprep.subr.bf16.mxu0 %v1830_v2 }
  0x91   :  { %1630 = vmatpush3.bf16.msra.mxu1 %v1908_v42  ;;  %v1611_v42 = vld [vmem:[%s2565_s8] ss:$0 sm:$0xff] }
  0x92   :  { %1631 = vmatprep.subr.bf16.mxu1 %v1909_v43 }
  0x93   :  { %1000 = vmatpush1.bf16.msra.mxu0 %v1828_v3 }
  0x94   :  { %1001 = vmatprep.subr.bf16.mxu0 %v1836_v4 }
  0x95   :  { %1632 = vmatpush3.bf16.msra.mxu1 %v1910_v44 }
  0x97   :  { %1002 = vmatpush1.bf16.msra.mxu0 %v1834_v5 }
  0x98   :  { %1003 = vmatprep.subr.bf16.mxu0 %v1842_v6  ;;  %v1911_v6 = vld [vmem:[%s2562_s5] sm:$0xff]  }
  0x9b   :  { %1004 = vmatpush1.bf16.msra.mxu0 %v1840_v7  ;;  %v1964_v7 = vmov 0.0  }
  0x9c   :  { %1005 = vmatprep.subr.bf16.mxu0 %v1848_v8  ;;  %1653 = vmatprep.subr.bf16.mxu1 %v1964_v7  ;;  %v1912_v8 = vld [vmem:[%s2562_s5 + $0x8] sm:$0xff]  }
  0x9f   :  { %1006 = vmatpush1.bf16.msra.mxu0 %v1846_v9  ;;  %v1913_v9 = vld [vmem:[%s2562_s5 + $0x10] sm:$0xff]  }
  0xa0   :  { %1007 = vmatprep.subr.bf16.mxu0 %v1854_v10  ;;  %v1914_v10 = vld [vmem:[%s2562_s5 + $0x18] sm:$0xff]  }
  0xa3   :  { %1008 = vmatpush1.bf16.msra.mxu0 %v1852_v11  ;;  %v1915_v11 = vld [vmem:[%s2562_s5 + $0x20] sm:$0xff]  }
  0xa4   :  { %1009 = vmatprep.subr.bf16.mxu0 %v1860_v12  ;;  %v1916_v12 = vld [vmem:[%s2562_s5 + $0x28] sm:$0xff]  }
  0xa7   :  { %1010 = vmatpush1.bf16.msra.mxu0 %v1858_v13  ;;  %v1917_v13 = vld [vmem:[%s2562_s5 + $0x30] sm:$0xff]  }
  0xa8   :  { %1011 = vmatprep.subr.bf16.mxu0 %v1866_v14  ;;  %v1918_v14 = vld [vmem:[%s2562_s5 + $0x38] sm:$0xff]  }
  0xab   :  { %1012 = vmatpush1.bf16.msra.mxu0 %v1864_v16 }
  0xac   :  { %1013 = vmatprep.subr.bf16.mxu0 %v1872_v17  ;;  %v1584_v17 = vld [vmem:[%s2561_s4] ss:$0 sm:$0xff] }
  0xaf   :  { %1014 = vmatpush1.bf16.msra.mxu0 %v1870_v19 }
  0xb0   :  { %1015 = vmatprep.subr.bf16.mxu0 %v1878_v20 }
  0xb3   :  { %1016 = vmatpush1.bf16.msra.mxu0 %v1876_v21 }
  0xb4   :  { %1017 = vmatprep.subr.bf16.mxu0 %v1884_v22 }
  0xb7   :  { %1018 = vmatpush1.bf16.msra.mxu0 %v1882_v23 }
  0xb8   :  { %1019 = vmatprep.subr.bf16.mxu0 %v1890_v24 }
  0xbb   :  { %1020 = vmatpush1.bf16.msra.mxu0 %v1888_v25 }
  0xbc   :  { %1021 = vmatprep.subr.bf16.mxu0 %v1893_v26 }
  0xbf   :  { %1022 = vmatpush1.bf16.msra.mxu0 %v1891_v27 }
  0xc2   :  { %1024 = vmatmul.mubr.bf16.vlgmr.msra.gmra.mrb[0].mxu0 %v86_v28  ;;  %v1919_v28 = vld [vmem:[%s2564_s7] sm:$0xff]   ;;  %s1446_s7 = sshll.u32 %s1966_s6, 4  ;;  %s1447_s7 = int_to_ptr.vmem [resolvable:$true] %s1446_s7 }
  0xc3   :  { %s1939_s8 = scalar_lea.vmem %s1447_s7, 32  ;;  %p1944_p1 = scmp.lt.s32.totalorder %s1447_s7, %s1447_s7 }
  0xc4   :  { %p1940_p0 = scmp.ne.s32.totalorder %s1447_s7, %s1939_s8  ;;  %p1945_p2 = scmp.lt.s32.totalorder %s1939_s8, %s1939_s8 }
  0xc6   :  { %p1946_p3 = por %p1945_p2, %p1944_p1 }
  0xc8   :  { %p1947_p4 = pnand %p1946_p3, %p1940_p0 }
 0x13c   :  { %v902_v45 = vpop.f32.mrb[0].mxu1 }
 0x13d   :  { %v904_v46 = vpop.f32.mrb[1].mxu1  ;;  %v903_v56 = vadd.f32 %v902_v45, %v221_v54 }
 0x13e   :  { %v906_v48 = vpop.f32.mrb[2].mxu1  ;;  %v905_v47 = vadd.f32 %v904_v46, %v225_v55 }
 0x13f   :  { %v907_v49 = vpop.f32.mrb[3].mxu1 }
 0x195   :  { %v1025_v57 = vpop.f32.mrb[0].mxu0 }
 0x196   :  { %v1686_v58 = vadd.f32 %v1025_v57, %v903_v56  ;;  %v1027_v18 = vpop.f32.mrb[1].mxu0 }
 0x197   :  { %v1688_v59 = vadd.f32 %v1027_v18, %v905_v47  ;;  %v1029_v60 = vpop.f32.mrb[2].mxu0 }
 0x198   :  { %v1582_v61 = vmul.f32 -1.442695, %v1686_v58  ;;  %v1030_v62 = vpop.f32.mrb[3].mxu0 }
 0x199   :  { %v1583_v52 = vmul.f32 -1.442695, %v1688_v59 }
 0x19a   :  { %1923 = vpow2.f32 %v1582_v61 }
 0x19b   :  { %1925 = vpow2.f32 %v1583_v52 }
 0x1a4   :  { %v1924_v63 = vpop.eup %1923 }
 0x1a5   :  { %v1926_v0 = vpop.eup %1925  ;;  %v1038_v1 = vadd.f32 1.0, %v1924_v63 }
 0x1a6   :  { %v1039_v2 = vadd.f32 1.0, %v1926_v0 }
 0x1a7   :  { %1927 = vrcp.f32 %v1038_v1 }
 0x1a8   :  { %1929 = vrcp.f32 %v1039_v2 }
 0x1b1   :  { %v1928_v15 = vpop.eup %1927 }
 0x1b2   :  { %v1930_v3 = vpop.eup %1929  ;;  %v1044_v5 = vpack.c.bf16 %v1928_v15, %v1928_v15 }
 0x1b3   :  { %v1045_v4 = vpack.c.bf16 %v1930_v3, %v1930_v3 }
 0x1b5   :  { %1213 = vmatprep.mubr.bf16.mxu1 %v1045_v4 }
 0x1b6   :  { %1214 = vmatmul.mubr.bf16.vlgmr.msra.gmra.mrb[4].mxu1 %v1044_v5 }
 0x1b7   :  { %1654 = vmatpush3.bf16.msra.mxu1 %v1911_v6  ;;  %1669 = vmatprep.mubr.msk.bf16.mxu1 %vm1965_vm0, %v1964_v7 }
 0x1b8   :  { %1655 = vmatprep.subr.bf16.mxu1 %v1964_v7 }
 0x1bb   :  { %1656 = vmatpush3.bf16.msra.mxu1 %v1912_v8 }
 0x1bc   :  { %1657 = vmatprep.subr.bf16.mxu1 %v1964_v7 }
 0x1bf   :  { %1658 = vmatpush3.bf16.msra.mxu1 %v1913_v9 }
 0x1c0   :  { %1659 = vmatprep.subr.bf16.mxu1 %v1964_v7 }
 0x1c3   :  { %1660 = vmatpush3.bf16.msra.mxu1 %v1914_v10 }
 0x1c4   :  { %1661 = vmatprep.subr.bf16.mxu1 %v1964_v7 }
 0x1c7   :  { %1662 = vmatpush3.bf16.msra.mxu1 %v1915_v11 }
 0x1c8   :  { %1663 = vmatprep.subr.bf16.mxu1 %v1964_v7 }
 0x1cb   :  { %1664 = vmatpush3.bf16.msra.mxu1 %v1916_v12 }
 0x1cc   :  { %1665 = vmatprep.subr.bf16.mxu1 %v1964_v7 }
 0x1cf   :  { %1666 = vmatpush3.bf16.msra.mxu1 %v1917_v13 }
 0x1d0   :  { %1667 = vmatprep.subr.bf16.mxu1 %v1964_v7 }
 0x1d3   :  { %1668 = vmatpush3.bf16.msra.mxu1 %v1918_v14 }
 0x1d4   :  { %1673 = vmatprep.subr.bf16.mxu1 %v1964_v7 }
 0x289   :  { %v1633_v16 = vpop.f32.mrb[4].mxu1 }
 0x28a   :  { %v1634_v19 = vpop.f32.mrb[5].mxu1 }
 0x28b   :  { %v1635_v20 = vadd.f32 %v1634_v19, %v1633_v16  ;;  %v1636_v21 = vpop.f32.mrb[6].mxu1 }
 0x28c   :  { %v1637_v22 = vpop.f32.mrb[7].mxu1 }
 0x28d   :  { %v1216_v23 = vadd.f32 %v1635_v20, %v1584_v17 }
 0x28f   :  { %v1601_v24 = vmul.f32 -1.442695, %v1216_v23 }
 0x291   :  { %1931 = vpow2.f32 %v1601_v24 }
 0x29b   :  { %v1932_v25 = vpop.eup %1931 }
 0x29c   :  { %v1224_v26 = vadd.f32 1.0, %v1932_v25 }
 0x29e   :  { %1933 = vrcp.f32 %v1224_v26 }
 0x2a8   :  { %v1934_v27 = vpop.eup %1933 }
 0x2a9   :  { %v1227_v29 = vpack.c.bf16 %v1934_v27, %v1934_v27 }
 0x2ab   :  { %1670 = vmatmul.mubr.bf16.vlgmr.msra.gmra.mrb[8].mxu1 %v1227_v29 }
 0x2ac   :  { %1674 = vmatpush3.bf16.msra.mxu1 %v1919_v28  ;;  %1681 = vmatprep.mubr.msk.bf16.mxu1 %vm1965_vm0, %v1964_v7 }
 0x2ad   :  { %1675 = vmatprep.subr.bf16.mxu1 %v1964_v7 }
 0x2b0   :  { %1676 = vmatpush3.bf16.msra.mxu1 %v1920_v30 }
 0x2b1   :  { %1677 = vmatprep.subr.bf16.mxu1 %v1964_v7 }
 0x2b4   :  { %1678 = vmatpush3.bf16.msra.mxu1 %v1921_v31 }
 0x2b5   :  { %1679 = vmatprep.subr.bf16.mxu1 %v1964_v7 }
 0x2b8   :  { %1680 = vmatpush3.bf16.msra.mxu1 %v1922_v32 }
 0x37e   :  { %v1333_v34 = vpop.f32.mrb[8].mxu1 }
 0x37f   :  { %v1334_v35 = vadd.f32 %v1602_v33, %v1333_v34  ;;  %v1671_v36 = vpop.f32.mrb[9].mxu1 }
 0x380   :  { %v1336_v37 = vpop.f32.mrb[10].mxu1 }
 0x381   :  { %vm1339_vm1 = vcmp.gt.f32.partialorder %v1334_v35, 0.0  ;;  %v1340_v38 = vmul.f32 0.01, %v1334_v35  ;;  %v1672_v39 = vpop.f32.mrb[11].mxu1 }
 0x383   :  { %v1341_v40 = vsel %vm1339_vm1, %v1334_v35, %v1340_v38 }
 0x384   :  { %v1342_v41 = vpack.c.bf16 %v1341_v40, %v1341_v40 }
 0x386   :  { %1682 = vmatmul.mubr.msk.bf16.vlgmr.msra.gmra.mrb[12].mxu1 %vm1382_vm2, %v1342_v41 }
 0x459   :  { %v1420_v43 = vpop.f32.mrb[12].mxu1 }
 0x45a   :  { %v1421_v44 = vadd.f32 %v1611_v42, %v1420_v43  ;;  %v1683_v45 = vpop.f32.mrb[13].mxu1 }
 0x45b   :  { %v1423_v46 = vpop.f32.mrb[14].mxu1 }
 0x45c   :  { %v1684_v48 = vpop.f32.mrb[15].mxu1  ;;  %v1427_v49 = vsel %vm1426_vm3, %v1421_v44, -inf }
 0x45d   :  { %1428 = vmax.xlane.f32.xlu0 %v1427_v49 }
 0x4ea   :  { %v1429_v50 = vpop.xlane.xlu0 %1428 }
 0x4eb   :  { %v1430_v51 = vsub.f32 %v1421_v44, %v1429_v50 }
 0x4ed   :  { %v1431_v53 = vmul.f32 1.442695, %v1430_v51 }
 0x4ef   :  { %1935 = vpow2.f32 %v1431_v53 }
 0x4f9   :  { %v1936_v54 = vpop.eup %1935 }
 0x4fa   :  { %v1433_v55 = vsel %vm1426_vm3, %v1936_v54, 0.0 }
 0x4fb   :  { %1434 = vadd.xlane.f32.xlu0 %v1433_v55 }
 0x588   :  { %v1435_v56 = vpop.xlane.xlu0 %1434 }
 0x589   :  { %1937 = vlog2.f32 %v1435_v56 }
 0x593   :  { %v1938_v47 = vpop.eup %1937 }
 0x594   :  { %v1437_v57 = vmul.f32 0.6931472, %v1938_v47 }
 0x596   :  { %v1438_v58 = vsub.f32 %v1430_v51, %v1437_v57 }
 0x598   :  { %1439 = vst [vmem:[#allocation2] sm:$0x3] %v1438_v58 }
 0x599   :  { %1950 = shalt.err (!%p1947_p4)
}
 0x59a   :  { %s1951_s21 = scalar_lea.hbm %s2566_s9, 32 }
 0x59b   :  { %p1952_p5 = scmp.ne.s32.totalorder %s2566_s9, %s1951_s21  ;;  %p1955_p6 = scmp.lt.u32.totalorder %s1951_s21, %s2566_s9 }
 0x59d   :  { %p1957_p7 = pnand %p1955_p6, %p1952_p5 }
 0x59f   :  { %1960 = shalt.err (!%p1957_p7)
}
 0x5a0   :  { %1449 = dma.vmem_to_hbm [thread:$0]  %s1447_s7, 32, %s2566_s9, [#allocation3]  }
 0x5a1   :  { %1961 = dma.done.wait [#allocation3], 32  }
 0x5a2   :  { %1962 = vsyncadd [#allocation3], 4294967264 }
 0x5a3   :  { %1453 = vsyncpa [#allocation3], 1 }

</bundles_post_ra>
